<compile_context>
chip_gen: v5e
topology: v5e:2x2
jax: 0.10.0
libtpu: 0.0.40
codegen_flags: <defaults>
</compile_context>

<pallas_src>
import functools

import jax
import jax.numpy as jnp
import numpy as np
from jax.experimental import pallas as pl
from jax.experimental.pallas import tpu as pltpu


# ---------------------------------------------------------------------------
# Kernel bodies
# ---------------------------------------------------------------------------

def _agg_kernel_mxu(x_ref, w_ref, b_ref, *rest, has_mask):
    """MXU path: both contractions as batched matmuls, x in native dtype.

    x_ref : (Tb, S, D)   block of batch rows (native dtype, e.g. bf16/f32)
    w_ref : (1, D)       linear weight * 1/sqrt(D), float32
    b_ref : (1,)         linear bias * 1/sqrt(D), float32, in SMEM
    m_ref : (Tb, 1, S)   optional padding mask (bf16, 1.0 => padded)
    o_ref : (Tb, 1, D)   aggregated output block
    """
    if has_mask:
        m_ref, o_ref = rest
    else:
        (o_ref,) = rest
        m_ref = None

    x = x_ref[...]                                   # (Tb, S, D) native dtype
    tb, _, d = x.shape
    b = b_ref[0]                                     # scalar (already scaled)

    # scores[b, 1, s] = sum_d w[d] * x[b, s, d] + bias     (MXU, f32 acc)
    w_b = jnp.broadcast_to(w_ref[...].astype(x.dtype).reshape(1, 1, d),
                           (tb, 1, d))               # tiny (Tb,1,D) operand
    s3 = jnp.einsum("bqd,bsd->bqs", w_b, x,
                    preferred_element_type=jnp.float32,
                    precision=jax.lax.Precision.HIGHEST) + b      # (Tb,1,S) f32

    if has_mask:
        s3 = s3 + m_ref[...].astype(jnp.float32) * (-1000000000.0)

    # numerically-stable softmax over S (lanes), un-normalized
    m3 = jnp.max(s3, axis=-1, keepdims=True)                       # (Tb,1,1)
    e3 = jnp.exp(s3 - m3)                                          # (Tb,1,S)
    l3 = jnp.sum(e3, axis=-1, keepdims=True)                       # (Tb,1,1)

    # out[b, 1, d] = sum_s e[b,s] * x[b,s,d]      (MXU, f32 acc, x native dtype)
    out3 = jnp.einsum("bqs,bsd->bqd", e3.astype(x.dtype), x,
                      preferred_element_type=jnp.float32,
                      precision=jax.lax.Precision.HIGHEST)         # (Tb,1,D)

    # fold softmax normalization into the small (Tb,1,D) result (exact recip)
    o_ref[...] = (out3 * pl.reciprocal(l3, approx=False)).astype(o_ref.dtype)


def _agg_kernel_vpu(x_ref, w_ref, b_ref, *rest, has_mask):
    """VPU fallback for tiny S*D (per-row MXU matmuls would serialize).

    x_ref : (Tb, S, D); w_ref : (1, D); b_ref : (1,) SMEM;
    m_ref : (Tb, S) optional; o_ref : (Tb, D).
    """
    if has_mask:
        m_ref, o_ref = rest
    else:
        (o_ref,) = rest
        m_ref = None

    x = x_ref[...]                                   # native dtype
    w = w_ref[...].astype(jnp.float32)               # (1, D)
    b = b_ref[0]

    # Pass 1 (scores): the f32 product is transient (freed before pass 2);
    # x itself is never copied/held in f32 across the softmax.
    scores = jnp.sum(x.astype(jnp.float32) * w, axis=-1) + b       # (Tb, S)
    if has_mask:
        scores = scores + m_ref[...].astype(jnp.float32) * (-1000000000.0)

    m_max = jnp.max(scores, axis=-1, keepdims=True)                # (Tb, 1)
    e = jnp.exp(scores - m_max)                                    # (Tb, S)
    l = jnp.sum(e, axis=-1, keepdims=True)                         # (Tb, 1)

    # Pass 2 (output): re-read x in native dtype; un-normalized accumulation.
    acc = jnp.sum(e[:, :, None] * x.astype(jnp.float32), axis=1)   # (Tb, D)
    o_ref[...] = (acc * pl.reciprocal(l, approx=False)).astype(o_ref.dtype)

    # TODO(synk): nn.Dropout(p=0.1) is identity in eval mode; training-mode
    # stochastic dropout (pltpu.prng_seed + prng_random_bits) is not applied.


# ---------------------------------------------------------------------------
# Block / VMEM sizing
# ---------------------------------------------------------------------------

def _choose_block_b(B, S, D, itemsize, x_buffer_bytes):
    """Batch rows per grid step: ~x_buffer_bytes of x per block.

    - multiple of 8 (sublane-friendly) unless the whole batch fits in one block
    - >= 2 grid steps when B >= 16 so ("parallel",) can use both v7x TCs
    - prefer divisors of B so the trailing block is not mostly padding
    """
    if B <= 8:
        return B
    bytes_per_row = max(1, S * D * itemsize)
    rows = max(8, (x_buffer_bytes // bytes_per_row) // 8 * 8)
    if B >= 16:
        rows = min(rows, max(8, (B // 2) // 8 * 8))   # guarantee >= 2 steps
    if rows >= B:
        return B
    rows = max(8, (rows // 8) * 8)
    for cand in range(rows, 7, -8):                   # largest divisor of B <= rows
        if B % cand == 0:
            return cand
    return rows


def _vmem_limit(block_b, S, D, x_item, out_item, mask_item, use_mxu):
    """Scoped-VMEM request from actual double-buffered bytes + temps + headroom."""
    x_blk = block_b * S * D * x_item
    out_blk = block_b * D * out_item
    mask_blk = block_b * S * mask_item
    dbuf = 2 * (x_blk + out_blk + mask_blk) + 2 * D * 4
    if use_mxu:
        temps = 4 * block_b * (S + D) * 4             # only small (Tb,1,*) f32 temps
    else:
        temps = 2 * block_b * S * D * 4               # one block-sized f32 temp/pass
    need = dbuf + temps + (4 << 20)                   # compiler scratch headroom
    # Stay well under v7x's 64 MiB/TC while comfortably fitting v5e/v6e (128 MiB).
    return int(min(max(need, 24 << 20), 40 << 20))


# ---------------------------------------------------------------------------
# Wrapper
# ---------------------------------------------------------------------------

def feature_aggregation(x, weight, bias, masking_matrix=None, *,
                        block_b=None, use_mxu=None):
    """x: (B, S, D); weight: (1, D); bias: (1,); mask: (B, S) or None."""
    B, S, D = x.shape
    scale = 1.0 / np.sqrt(D)

    # Fold the 1/sqrt(D) scale into the (tiny) weight/bias on the host.
    w2 = jnp.asarray(weight, jnp.float32).reshape(1, D) * scale
    b1 = jnp.asarray(bias, jnp.float32).reshape(1) * scale

    if use_mxu is None:
        # Per-row (1,S)x(S,D) matmuls need enough work to amortize MXU setup;
        # below this, thousands of tiny batched matmuls would serialize.
        use_mxu = (S * D) >= 128 * 128

    x_itemsize = jnp.dtype(x.dtype).itemsize
    target_bytes = (8 << 20) if use_mxu else (4 << 20)
    if block_b is None:
        block_b = _choose_block_b(B, S, D, x_itemsize, target_bytes)
    grid = (pl.cdiv(B, block_b),)

    has_mask = masking_matrix is not None

    in_specs = [
        pl.BlockSpec((block_b, S, D), lambda i: (i, 0, 0)),       # x (native dtype)
        pl.BlockSpec((1, D), lambda i: (0, 0)),                   # scaled weight
        pl.BlockSpec(memory_space=pltpu.MemorySpace.SMEM),        # scaled bias
    ]
    args = [x, w2, b1]

    mask_itemsize = 0
    if has_mask:
        # narrow mask dtype (bf16): 2x less HBM traffic than f32, exact for 0/1
        m = jnp.asarray(masking_matrix).astype(jnp.bfloat16)
        mask_itemsize = 2
        if use_mxu:
            m = m.reshape(B, 1, S)
            in_specs.append(pl.BlockSpec((block_b, 1, S), lambda i: (i, 0, 0)))
        else:
            m = m.reshape(B, S)
            in_specs.append(pl.BlockSpec((block_b, S), lambda i: (i, 0)))
        args.append(m)

    if use_mxu:
        out_shape = jax.ShapeDtypeStruct((B, 1, D), x.dtype)
        out_spec = pl.BlockSpec((block_b, 1, D), lambda i: (i, 0, 0))
        kern = functools.partial(_agg_kernel_mxu, has_mask=has_mask)
    else:
        out_shape = jax.ShapeDtypeStruct((B, D), x.dtype)
        out_spec = pl.BlockSpec((block_b, D), lambda i: (i, 0))
        kern = functools.partial(_agg_kernel_vpu, has_mask=has_mask)

    vmem_limit = _vmem_limit(block_b, S, D, x_itemsize, x_itemsize,
                             mask_itemsize, use_mxu)

    out = pl.pallas_call(
        kern,
        out_shape=out_shape,
        grid_spec=pltpu.PrefetchScalarGridSpec(
            num_scalar_prefetch=0,
            grid=grid,
            in_specs=in_specs,
            out_specs=out_spec,
        ),
        compiler_params=pltpu.CompilerParams(
            dimension_semantics=("parallel",),
            vmem_limit_bytes=vmem_limit,
        ),
    )(*args)
    return out.reshape(B, D)


# ---------------------------------------------------------------------------
# Reference + tests
# ---------------------------------------------------------------------------

def _reference(x, weight, bias, masking_matrix=None):
    """float64 numpy reference of the PyTorch forward (eval mode)."""
    xf = np.asarray(jnp.asarray(x, jnp.float32), dtype=np.float64)
    w = np.asarray(jnp.asarray(weight, jnp.float32), dtype=np.float64).reshape(-1)
    b = float(np.asarray(jnp.asarray(bias, jnp.float32)).reshape(-1)[0])
    D = xf.shape[-1]
    scores = (xf @ w + b) / np.sqrt(D)
    if masking_matrix is not None:
        scores = scores + np.asarray(masking_matrix, np.float64) * (-1000000000.0)
    scores = scores - scores.max(axis=-1, keepdims=True)
    e = np.exp(scores)
    p = e / e.sum(axis=-1, keepdims=True)
    return np.einsum("bs,bsd->bd", p, xf)


def _run_case(key, B, S, D, dtype, rtol, atol):
    kx, kw, km = jax.random.split(key, 3)
    x = jax.random.normal(kx, (B, S, D), dtype=jnp.float32).astype(dtype)

    # xavier_uniform_ for Linear(D, 1).weight of shape (1, D); bias zeros.
    bound = float(np.sqrt(6.0 / (D + 1)))
    weight = jax.random.uniform(kw, (1, D), dtype=jnp.float32,
                                minval=-bound, maxval=bound)
    bias = jnp.zeros((1,), dtype=jnp.float32)

    # padding mask: True marks padded positions
    mask = jax.random.uniform(km, (B, S)) > 0.7

    out = feature_aggregation(x, weight, bias, mask)
    jax.block_until_ready(out)
    np.testing.assert_allclose(
        np.asarray(out.astype(jnp.float32)),
        _reference(x, weight, bias, np.asarray(mask)).astype(np.float32),
        rtol=rtol, atol=atol)

    out_nm = feature_aggregation(x, weight, bias, None)
    jax.block_until_ready(out_nm)
    np.testing.assert_allclose(
        np.asarray(out_nm.astype(jnp.float32)),
        _reference(x, weight, bias, None).astype(np.float32),
        rtol=rtol, atol=atol)


if __name__ == "__main__":
    key = jax.random.PRNGKey(0)
    k1, k2, k3 = jax.random.split(key, 3)

    # VPU fallback path: single block (block_b == B), f32
    _run_case(k1, B=2, S=8, D=32, dtype=jnp.float32, rtol=3e-5, atol=1e-5)
    # VPU fallback path: multi-block grid with a partial trailing block
    _run_case(k2, B=20, S=8, D=32, dtype=jnp.float32, rtol=3e-5, atol=1e-5)
    # MXU path: bf16 x fed natively into both contractions, 2 grid steps
    _run_case(k3, B=16, S=128, D=128, dtype=jnp.bfloat16, rtol=3e-2, atol=3e-2)

    print("KERNEL_OK")
</pallas_src>

<mosaic_0001>
module attributes {stable_mosaic.version = 11 : i64} {
  func.func @_agg_kernel_vpu(%arg0: i32, %arg1: memref<2x8x32xf32, #tpu.memory_space<vmem>>, %arg2: memref<1x32xf32, #tpu.memory_space<vmem>>, %arg3: memref<1xf32, #tpu.memory_space<smem>>, %arg4: memref<2x8xbf16, #tpu.memory_space<vmem>>, %arg5: memref<2x32xf32, #tpu.memory_space<vmem>>) attributes {dimension_semantics = [#tpu.dimension_semantics<parallel>], iteration_bounds = array<i64: 1>, scalar_prefetch = 0 : i64, scratch_operands = 0 : i64, tpu.core_type = #tpu.core_type<tc>, window_params = [{transform_indices = @transform_0, window_bounds = array<i64: 2, 8, 32>}, {pipeline_mode = #tpu.pipeline_mode<synchronous>, transform_indices = @transform_1, window_bounds = array<i64: 1, 32>}, {transform_indices = @transform_2, window_bounds = array<i64: 1>}, {transform_indices = @transform_3, window_bounds = array<i64: 2, 8>}, {transform_indices = @transform_4, window_bounds = array<i64: 2, 32>}]} {
    %c0 = arith.constant 0 : index
    %c0_0 = arith.constant 0 : index
    %c0_1 = arith.constant 0 : index
    %0 = vector.load %arg1[%c0, %c0_0, %c0_1] : memref<2x8x32xf32, #tpu.memory_space<vmem>>, vector<2x8x32xf32>
    %c0_2 = arith.constant 0 : index
    %c0_3 = arith.constant 0 : index
    %1 = vector.load %arg2[%c0_2, %c0_3] : memref<1x32xf32, #tpu.memory_space<vmem>>, vector<1x32xf32>
    %c0_4 = arith.constant 0 : index
    %2 = memref.load %arg3[%c0_4] : memref<1xf32, #tpu.memory_space<smem>>
    %3 = vector.shape_cast %1 : vector<1x32xf32> to vector<1x1x32xf32>
    %4 = vector.broadcast %3 : vector<1x1x32xf32> to vector<2x8x32xf32>
    %5 = arith.mulf %0, %4 : vector<2x8x32xf32>
    %cst = arith.constant dense<0.000000e+00> : vector<2x8xf32>
    %6 = vector.multi_reduction <add>, %5, %cst [2] : vector<2x8x32xf32> to vector<2x8xf32>
    %7 = vector.broadcast %2 : f32 to vector<2x8xf32>
    %8 = arith.addf %6, %7 : vector<2x8xf32>
    %c0_5 = arith.constant 0 : index
    %c0_6 = arith.constant 0 : index
    %9 = vector.load %arg4[%c0_5, %c0_6] : memref<2x8xbf16, #tpu.memory_space<vmem>>, vector<2x8xbf16>
    %10 = arith.extf %9 : vector<2x8xbf16> to vector<2x8xf32>
    %cst_7 = arith.constant -1.000000e+09 : f32
    %11 = vector.broadcast %cst_7 : f32 to vector<2x8xf32>
    %12 = arith.mulf %10, %11 : vector<2x8xf32>
    %13 = arith.addf %8, %12 : vector<2x8xf32>
    %cst_8 = arith.constant dense<0xFF800000> : vector<2xf32>
    %14 = vector.multi_reduction <maximumf>, %13, %cst_8 [1] : vector<2x8xf32> to vector<2xf32>
    %15 = vector.shape_cast %14 : vector<2xf32> to vector<2x1xf32>
    %16 = vector.broadcast %15 : vector<2x1xf32> to vector<2x8xf32>
    %17 = arith.subf %13, %16 : vector<2x8xf32>
    %18 = math.exp %17 : vector<2x8xf32>
    %cst_9 = arith.constant dense<0.000000e+00> : vector<2xf32>
    %19 = vector.multi_reduction <add>, %18, %cst_9 [1] : vector<2x8xf32> to vector<2xf32>
    %20 = vector.shape_cast %19 : vector<2xf32> to vector<2x1xf32>
    %21 = vector.shape_cast %18 : vector<2x8xf32> to vector<2x8x1xf32>
    %22 = vector.broadcast %21 : vector<2x8x1xf32> to vector<2x8x32xf32>
    %23 = arith.mulf %22, %0 : vector<2x8x32xf32>
    %cst_10 = arith.constant dense<0.000000e+00> : vector<2x32xf32>
    %24 = vector.multi_reduction <add>, %23, %cst_10 [1] : vector<2x8x32xf32> to vector<2x32xf32>
    %25 = tpu.reciprocal %20 : vector<2x1xf32> -> vector<2x1xf32>
    %26 = vector.broadcast %25 : vector<2x1xf32> to vector<2x32xf32>
    %27 = arith.mulf %24, %26 : vector<2x32xf32>
    %c0_11 = arith.constant 0 : index
    %c0_12 = arith.constant 0 : index
    %28 = vector.load %arg5[%c0_11, %c0_12] : memref<2x32xf32, #tpu.memory_space<vmem>>, vector<2x32xf32>
    tpu.vector_store %arg5[%c0_11, %c0_12], %27 {strides = array<i32>} : memref<2x32xf32, #tpu.memory_space<vmem>>, vector<2x32xf32>,
    return
  }
  func.func @transform_0(%arg0: i32) -> (i32, i32, i32) {
    %c0_i32 = arith.constant 0 : i32
    %c0_i32_0 = arith.constant 0 : i32
    %c0_i32_1 = arith.constant 0 : i32
    return %arg0, %c0_i32, %c0_i32_0 : i32, i32, i32
  }
  func.func @transform_1(%arg0: i32) -> (i32, i32) {
    %c0_i32 = arith.constant 0 : i32
    %c0_i32_0 = arith.constant 0 : i32
    %c0_i32_1 = arith.constant 0 : i32
    return %c0_i32, %c0_i32_0 : i32, i32
  }
  func.func @transform_2(%arg0: i32) -> i32 {
    %c0_i32 = arith.constant 0 : i32
    %c0_i32_0 = arith.constant 0 : i32
    return %c0_i32 : i32
  }
  func.func @transform_3(%arg0: i32) -> (i32, i32) {
    %c0_i32 = arith.constant 0 : i32
    %c0_i32_0 = arith.constant 0 : i32
    return %arg0, %c0_i32 : i32, i32
  }
  func.func @transform_4(%arg0: i32) -> (i32, i32) {
    %c0_i32 = arith.constant 0 : i32
    %c0_i32_0 = arith.constant 0 : i32
    return %arg0, %c0_i32 : i32, i32
  }
}

</mosaic_0001>

<bundles_post_ra>
// kernel: tpu_custom_call.1
= control target key start
LH: loop header
LB: loop body
LE: loop exit
PB: predicated region body
PF: predicated region fallthrough
CT: control target
= control target key end

     0   :  { %10 = vsyncpa [#allocation4], 0  ;;  %s311_s0 = inlined_call_operand.hbm [shape: f32[2,8,32], index: 0, kind: input, shape index: {}]   ;;  %s312_s1 = inlined_call_operand.vmem [shape: f32[1,32], index: 1, kind: input, shape index: {}]   ;;  %s313_s2 = inlined_call_operand.<no memory space> [shape: f32[1], index: 2, kind: input, shape index: {}]   ;;  %s314_s3 = inlined_call_operand.vmem [shape: bf16[2,8], index: 3, kind: input, shape index: {}]   ;;  %s315_s4 = inlined_call_operand.hbm [shape: f32[2,32], index: 4, kind: output, shape index: {}]  }
   0x1   :  { %11 = vsyncpa [#allocation5], 0  ;;  %s16_s17 = sshll.u32 %s311_s0, 4  ;;  %s253_s18 = smov [#allocation3]   ;;  %s17_s17 = int_to_ptr.hbm [resolvable:$true] %s16_s17 }
   0x2   :  { %s18_s19 = sshll.u32 %s253_s18, 4  ;;  %s254_s20 = smov 128   ;;  %s19_s19 = int_to_ptr.vmem [resolvable:$true] %s18_s19 }
   0x3   :  { %s255_s21 = smov 8  }
   0x4   :  { %24 = dma.hbm_to_vmem [thread:$0]  %s17_s17, 256, %s19_s19, [#allocation4], %s254_s20, %s254_s20, %s255_s21  }
   0x5   :  { %249 = dma.done.wait [#allocation4], 256  }
   0x6   :  { %250 = vsyncadd [#allocation4], 4294967040  ;;  %v61_v0 = vlaneseq  ;;  %v54_v2 = vld [vmem:[%s314_s3] sm:$0x1]  ;;  %v289_v3 = vld [vmem:[#allocation3] sm:$0xff]  ;;  %vm44_vm0 = vcmask 261120   ;;  %v51_v17 = vstv %s313_s2 }
   0x7   :  { %v55_v4 = vunpack.c.l.bf16 %v54_v2  ;;  %v194_v5 = vld [vmem:[%s312_s1] ss:$0 sm:$0xff]  ;;  %v36_v8 = vld [vmem:[#allocation3 + $0x8] sm:$0xff]  ;;  %v256_v15 = vmov 0   ;;  %vm90_vm1 = vcmask 1041409   ;;  %vm93_vm2 = vcmask 58368  }
   0x8   :  { %v62_v1 = vshrl.u32 %v61_v0, 7  ;;  %v42_v7 = vmul.f32 %v194_v5, %v289_v3  ;;  %v43_v10 = vmul.f32 %v194_v5, %v36_v8  ;;  %191 = vset.pattern.permute.xlu2 %v256_v15  ;;  %193 = vset.pattern.permute.xlu0 %v256_v15  ;;  %v87_v26 = vand.u32 127, %v61_v0  ;;  %s257_s2 = smov [#allocation6]   ;;  %s175_s28 = sshll.u32 %s315_s4, 4  ;;  %s176_s28 = int_to_ptr.hbm [resolvable:$true] %s175_s28 }
   0x9   :  { %v56_v6 = vmul.f32 -1e+09, %v55_v4  ;;  %s173_s25 = sshll.u32 %s257_s2, 4  ;;  %vm166_vm7 = vcmask 254976   ;;  %s174_s25 = int_to_ptr.vmem [resolvable:$true] %s173_s25 }
   0xa   :  { %190 = vset.pattern.permute.xlu1 %v62_v1  ;;  %v45_v9 = vsel %vm44_vm0, %v42_v7, 0.0  ;;  %v48_v11 = vsel %vm44_vm0, %v43_v10, 0.0 }
   0xb   :  { %58 = vst [vmem:[#allocation1] ss:$4 sm:$0xff] %v56_v6  ;;  %46 = vadd.xlane.f32.xlu0 %v45_v9 }
  0x12   :  { %v59_v12 = vld.sshfl [vmem:[#allocation1] sm:$0xff pattern:$0x73625140] }
  0x13   :  { %v60_v13 = vperm.slane %v59_v12, 0  ;;  %49 = vadd.xlane.f32.xlu0 %v48_v11  ;;  %v67_v14 = vperm.slane %v59_v12, 1 }
  0x15   :  { %65 = vperm.xlu1 %190, %v60_v13  }
  0x1d   :  { %72 = vperm.xlu1 %190, %v67_v14  }
  0x25   :  { %192 = vset.pattern.permute.xlu1 %v256_v15 }
  0x7e   :  { %v47_v16 = vpop.xlane.xlu0 %46 }
  0x7f   :  { %v52_v18 = vadd.f32 %v51_v17, %v47_v16 }
  0x86   :  { %v50_v21 = vpop.xlane.xlu0 %49 }
  0x87   :  { %v66_v19 = vpop.permute.xlu1 %65  ;;  %v53_v22 = vadd.f32 %v51_v17, %v50_v21 }
  0x88   :  { %v76_v20 = vadd.f32 %v66_v19, %v52_v18 }
  0x8a   :  { %81 = vperm.xlu2 %191, %v76_v20  }
  0x8f   :  { %v73_v23 = vpop.permute.xlu1 %72 }
  0x90   :  { %v77_v24 = vadd.f32 %v73_v23, %v53_v22 }
  0x92   :  { %84 = vperm.xlu2 %191, %v77_v24  }
  0xe4   :  { %v82_v25 = vpop.permute.xlu2 %81 }
  0xe5   :  { %v88_v28 = vperm.slane %v82_v25, %v87_v26 }
  0xec   :  { %v85_v27 = vpop.permute.xlu2 %84 }
  0xed   :  { %v89_v29 = vperm.slane %v85_v27, %v87_v26 }
  0xef   :  { %v91_v30 = vsel %vm90_vm1, %v89_v29, %v88_v28 }
  0xf0   :  { %v94_v31 = vsel %vm93_vm2, %v91_v30, -inf }
  0xf1   :  { %95 = vmax.xlane.f32.xlu0 %v94_v31 }
 0x164   :  { %v96_v32 = vpop.xlane.xlu0 %95 }
 0x165   :  { %v98_v33 = vperm.slane %v96_v32, 0  ;;  %v99_v34 = vperm.slane %v96_v32, 1 }
 0x167   :  { %v102_v35 = vsub.f32 %v76_v20, %v98_v33  ;;  %v103_v36 = vsub.f32 %v77_v24, %v99_v34 }
 0x169   :  { %v104_v37 = vmul.f32 1.442695, %v102_v35  ;;  %v106_v38 = vmul.f32 1.442695, %v103_v36 }
 0x16b   :  { %195 = vpow2.f32 %v104_v37 }
 0x16c   :  { %197 = vpow2.f32 %v106_v38 }
 0x171   :  { %v196_v39 = vpop.eup %195 }
 0x172   :  { %v198_v40 = vpop.eup %197  ;;  %111 = vperm.xlu1 %192, %v196_v39  }
 0x173   :  { %114 = vperm.xlu2 %191, %v198_v40  }
 0x1cd   :  { %v115_v41 = vpop.permute.xlu2 %114 }
 0x1ce   :  { %v117_v43 = vperm.slane %v115_v41, %v87_v26  ;;  %v126_v47 = vmul.f32 %v115_v41, %v36_v8 }
 0x1d0   :  { %v134_v49 = vsel %vm44_vm0, %v126_v47, 0.0 }
 0x1d1   :  { %v135_v51 = vrot.slane %v134_v49, 4 }
 0x1d3   :  { %v136_v54 = vadd.f32 %v135_v51, %v134_v49 }
 0x1d5   :  { %v137_v56 = vrot.slane %v136_v54, 2 }
 0x1d7   :  { %v138_v60 = vadd.f32 %v137_v56, %v136_v54 }
 0x1d9   :  { %v139_v2 = vrot.slane %v138_v60, 1 }
 0x1db   :  { %v140_v8 = vadd.f32 %v139_v2, %v138_v60 }
 0x1e4   :  { %v112_v42 = vpop.permute.xlu1 %111 }
 0x1e5   :  { %v116_v44 = vperm.slane %v112_v42, %v87_v26  ;;  %v125_v48 = vmul.f32 %v112_v42, %v289_v3 }
 0x1e7   :  { %v118_v45 = vsel %vm90_vm1, %v117_v43, %v116_v44  ;;  %v127_v50 = vsel %vm44_vm0, %v125_v48, 0.0 }
 0x1e8   :  { %v120_v46 = vsel %vm93_vm2, %v118_v45, 0.0  ;;  %v128_v52 = vrot.slane %v127_v50, 4 }
 0x1e9   :  { %121 = vadd.xlane.f32.xlu0 %v120_v46 }
 0x1ea   :  { %v129_v55 = vadd.f32 %v128_v52, %v127_v50 }
 0x1ec   :  { %v130_v58 = vrot.slane %v129_v55, 2 }
 0x1ee   :  { %v131_v63 = vadd.f32 %v130_v58, %v129_v55 }
 0x1f0   :  { %v132_v5 = vrot.slane %v131_v63, 1 }
 0x1f2   :  { %v133_v10 = vadd.f32 %v132_v5, %v131_v63 }
 0x25c   :  { %v122_v53 = vpop.xlane.xlu0 %121 }
 0x25d   :  { %199 = vrcp.f32 %v122_v53  ;;  %v152_v62 = vand.u32 2147483648, %v122_v53  ;;  %v150_v1 = vand.u32 2147483647, %v122_v53  ;;  %vm146_vm4 = vweird.f32 %v122_v53 }
 0x25f   :  { %v153_v4 = vor.u32 1.1754944e-38, %v152_v62  ;;  %vm151_vm6 = vcmp.eq.f32.partialorder %v150_v1, 8.507059e+37 }
 0x263   :  { %v200_v57 = vpop.eup %199 }
 0x264   :  { %v142_v59 = vmul.f32 %v200_v57, %v122_v53  ;;  %vm147_vm3 = vweird.f32 %v200_v57 }
 0x265   :  { %vm148_vm5 = vmor %vm146_vm4, %vm147_vm3 }
 0x266   :  { %v143_v61 = vsub.f32 1.0, %v142_v59 }
 0x268   :  { %v144_v0 = vmul.f32 %v200_v57, %v143_v61 }
 0x26a   :  { %v145_v3 = vadd.f32 %v200_v57, %v144_v0 }
 0x26c   :  { %v149_v6 = vsel %vm148_vm5, %v200_v57, %v145_v3 }
 0x26d   :  { %v154_v7 = vsel %vm151_vm6, %v153_v4, %v149_v6 }
 0x26e   :  { %v156_v9 = vrot.slane %v154_v7, 1  ;;  %v159_v12 = vmul.f32 %v154_v7, %v133_v10 }
 0x270   :  { %v160_v11 = vmul.f32 %v156_v9, %v140_v8 }
 0x272   :  { %v163_v13 = vrot.slane %v160_v11, 7 }
 0x274   :  { %v164_v14 = vsel %vm90_vm1, %v163_v13, %v159_v12 }
 0x275   :  { %167 = vst.msk [vmem:[#allocation6] sm:$0x3] %vm166_vm7, %v164_v14 }
 0x276   :  { %178 = dma.vmem_to_hbm [thread:$0]  %s174_s25, 32, %s176_s28, [#allocation5]  }
 0x277   :  { %251 = dma.done.wait [#allocation5], 32  }
 0x278   :  { %252 = vsyncadd [#allocation5], 4294967264 }
 0x279   :  { %183 = vsyncpa [#allocation4], 1 }
 0x27a   :  { %184 = vsyncpa [#allocation5], 1 }

</bundles_post_ra>
